<compile_context>
chip_gen: v7x
topology: tpu7x:2x2x1
jax: 0.10.0
libtpu: 0.0.40
codegen_flags: <defaults>
</compile_context>

<pallas_src>
import jax
import jax.numpy as jnp
from jax import lax
from jax.experimental import pallas as pl
from jax.experimental.pallas import tpu as pltpu


def _vmem_limit_bytes():
    """VMEM limit with headroom below physical capacity (review: never set the
    limit equal to v7x's 64 MiB physical VMEM)."""
    phys = 64 * 1024 * 1024          # conservative default (v7x per-core)
    try:
        phys = int(pltpu.get_tpu_info().vmem_capacity_bytes)
    except Exception:
        pass
    return max(32 * 1024 * 1024, min(100 * 1024 * 1024, (phys * 3) // 4))


def _lane_tile(total, cap):
    """Largest lane-tile t <= cap that tiles `total` legally on TPU: either
    t == total, or t is a multiple of 128 dividing total.

    NOTE(review #11): if total > cap and total has no multiple-of-128 divisor
    <= cap, the full extent is the only legal choice without padding, so the
    caller's VMEM budget can be exceeded for awkward sizes."""
    if total <= cap:
        return total
    t = (cap // 128) * 128
    while t >= 128:
        if total % t == 0:
            return t
        t -= 128
    return total


# ---------------------------------------------------------------------------
# Kernel 1: fused left/right projection, emitted channel-major (h-major).
# ---------------------------------------------------------------------------
def _fused_proj_kernel(x_ref, wlr_t_ref, blr_t_ref, lr_ref):
    """lr[c, k] = sum_d wlr_t[c, d] * x[k, d] + blr_t[c, 0].

    Rows c in [0, H)  hold left_proj(x) / M (mean folded in),
    rows c in [H, 2H) hold right_proj(x); k runs over the flattened (m, i)
    axis, so the output is already channel-major for kernel 2."""
    x = x_ref[0]                                        # (TK, D)
    lr = lax.dot_general(                               # A @ B^T on the MXU
        wlr_t_ref[...], x,
        dimension_numbers=(((1,), (1,)), ((), ())),
        preferred_element_type=jnp.float32)             # (2H, TK)
    lr = lr + blr_t_ref[...]                            # (2H, 1) lane-broadcast
    lr_ref[0] = lr.astype(lr_ref.dtype)


# ---------------------------------------------------------------------------
# Kernel 2: outer mean, batched over h on the MXU, h-major output.
# ---------------------------------------------------------------------------
def _outer_mean_kernel(l_ref, r_ref, o_ref):
    """outer[h, i, j] = sum_m left[h, m, i] * right[h, m, j]   (batched MXU).

    One batched dot_general and ONE slab store per grid step (no per-row
    unroll, no per-row stores)."""
    lT = l_ref[0]                                       # (H, M, TI)
    rT = r_ref[0]                                       # (H, M, N)
    lTc = jnp.swapaxes(lT, 1, 2)                        # (H, TI, M) minor swap
    outer_h = lax.dot_general(                          # batched over h
        lTc, rT,
        dimension_numbers=(((2,), (1,)), ((0,), (0,))),
        preferred_element_type=jnp.float32)             # (H, TI, N)
    o_ref[0] = outer_h.astype(o_ref.dtype)


# ---------------------------------------------------------------------------
# Kernel 3: proj_out -- one big A^T @ B matmul over the (i, j) lane tile.
# ---------------------------------------------------------------------------
def _proj_out_kernel(outer_ref, wo_ref, bo_ref, o_ref):
    """out[p, d] = sum_h outer[h, p] * wo[h, d] + bo[d], p over flattened (i,j)."""
    ot = outer_ref[0]                                   # (H, TJ)
    out = lax.dot_general(                              # A^T @ B on the MXU
        ot, wo_ref[...],
        dimension_numbers=(((0,), (0,)), ((), ())),
        preferred_element_type=jnp.float32)             # (TJ, D)
    out = out + bo_ref[...]                             # (1, D) broadcast
    # TODO(synk): if D < 128 this slab store is lane-masked; a d-major /
    # flattened lane-dense output layout would remove the masking.
    o_ref[0] = out.astype(o_ref.dtype)


def outer_mean(x, wl, bl, wr, br, wo, bo):
    """x: (B, M, N, D).  Weights are (in_features, out_features) = torch
    weight.T; biases are (1, out_features).  Returns (B, N, N, D)."""
    B, M, N, D = x.shape
    H = wl.shape[1]
    assert wl.shape == (D, H) and wr.shape == (D, H) and wo.shape == (H, D)
    assert bl.shape == (1, H) and br.shape == (1, H) and bo.shape == (1, D)

    vmem_limit = _vmem_limit_bytes()
    budget = vmem_limit // 2            # per-kernel working-set target

    # Fuse left/right projections into one weight and fold 1/M into the left
    # half (so no per-element divide remains anywhere).
    wlr_t = jnp.concatenate([wl.T / M, wr.T], axis=0)        # (2H, D)
    blr_t = jnp.concatenate([bl / M, br], axis=1).T          # (2H, 1)

    # ---- Kernel 1: fused projection, channel-major output ------------------
    # TODO(synk): a bf16 intermediate would halve this HBM round trip
    # (largest relative win on v5e); kept f32 to preserve 1e-4 accuracy.
    x3 = x.reshape(B, M * N, D)
    k1_unit = 2 * (D + 2 * H) * 4                       # bytes per lane of tk (dbuf)
    tk = _lane_tile(M * N, max(128, min(8192, budget // k1_unit)))
    lr = pl.pallas_call(
        _fused_proj_kernel,
        out_shape=jax.ShapeDtypeStruct((B, 2 * H, M * N), jnp.float32),
        grid_spec=pltpu.PrefetchScalarGridSpec(
            num_scalar_prefetch=0,
            grid=(B, (M * N) // tk),
            in_specs=[
                pl.BlockSpec((1, tk, D), lambda b, k: (b, k, 0)),
                pl.BlockSpec((2 * H, D), lambda b, k: (0, 0)),
                pl.BlockSpec((2 * H, 1), lambda b, k: (0, 0)),
            ],
            out_specs=pl.BlockSpec((1, 2 * H, tk), lambda b, k: (b, 0, k)),
        ),
        compiler_params=pltpu.CompilerParams(
            dimension_semantics=("parallel", "parallel"),
            vmem_limit_bytes=vmem_limit),
    )(x3, wlr_t, blr_t)

    # Free (row-major) re-view in XLA: (B, 2H, M*N) -> (B, 2H, M, N).
    lr4 = lr.reshape(B, 2 * H, M, N)

    # ---- Kernel 2: outer mean (batched over h), h-major output -------------
    # TODO(synk): for very large M*N, add an m reduction grid axis with an f32
    # accumulator (and/or pl.Buffered(1) on the grid-constant right slab)
    # instead of keeping the full (H, M, N) right slab VMEM-resident.
    fixed = 2 * H * M * N * 4                           # double-buffered right slab
    k2_unit = (3 * H * M + 3 * H * N) * 4               # per ti lane, incl. temps
    ti_cap = max(128, min(256, max(budget - fixed, 0) // k2_unit))
    ti = _lane_tile(N, ti_cap)
    outer = pl.pallas_call(
        _outer_mean_kernel,
        out_shape=jax.ShapeDtypeStruct((B, H, N, N), jnp.float32),
        grid_spec=pltpu.PrefetchScalarGridSpec(
            num_scalar_prefetch=0,
            grid=(B, N // ti),
            in_specs=[
                # left half ([0:H]) of lr4; lanes tiled to this step's i rows.
                pl.BlockSpec((1, H, M, ti), lambda b, it: (b, 0, 0, it)),
                # right half ([H:2H]) of lr4; full j range, index map constant
                # over `it`, so Pallas DMAs it only once per batch element.
                pl.BlockSpec((1, H, M, N), lambda b, it: (b, 1, 0, 0)),
            ],
            out_specs=pl.BlockSpec((1, H, ti, N), lambda b, it: (b, 0, it, 0)),
        ),
        compiler_params=pltpu.CompilerParams(
            dimension_semantics=("parallel", "parallel"),
            vmem_limit_bytes=vmem_limit),
    )(lr4, lr4)

    # Free re-view: (B, H, N, N) -> (B, H, N*N).  Kernel 3 reads lane tiles of
    # the flattened (i, j) axis, so the h-contraction is a single 2-D matmul
    # per grid step -- no in-kernel reshape/transpose needed anywhere.
    outer3 = outer.reshape(B, H, N * N)

    # ---- Kernel 3: proj_out over the h channel ------------------------------
    k3_unit = 2 * (H + D) * 4                           # bytes per lane of tj (dbuf)
    tj = _lane_tile(N * N, max(128, min(2048, budget // k3_unit)))
    out_flat = pl.pallas_call(
        _proj_out_kernel,
        out_shape=jax.ShapeDtypeStruct((B, N * N, D), x.dtype),
        grid_spec=pltpu.PrefetchScalarGridSpec(
            num_scalar_prefetch=0,
            grid=(B, (N * N) // tj),
            in_specs=[
                pl.BlockSpec((1, H, tj), lambda b, jt: (b, 0, jt)),
                pl.BlockSpec((H, D), lambda b, jt: (0, 0)),
                pl.BlockSpec((1, D), lambda b, jt: (0, 0)),
            ],
            out_specs=pl.BlockSpec((1, tj, D), lambda b, jt: (b, jt, 0)),
        ),
        compiler_params=pltpu.CompilerParams(
            dimension_semantics=("parallel", "parallel"),
            vmem_limit_bytes=vmem_limit),
    )(outer3, wo, bo)

    return out_flat.reshape(B, N, N, D)


def outer_mean_ref(x, wl, bl, wr, br, wo, bo):
    left = jnp.einsum('bmid,dh->bmih', x, wl) + bl[0]
    right = jnp.einsum('bmjd,dh->bmjh', x, wr) + br[0]
    outer = jnp.einsum('bmih,bmjh->bijh', left, right) / x.shape[1]
    return jnp.einsum('bijh,hd->bijd', outer, wo) + bo[0]


if __name__ == "__main__":
    B, M, N, D = 2, 4, 8, 32
    H = D  # hidden_dim defaults to dim

    key = jax.random.PRNGKey(0)
    kx, k1, k2, k3, k4, k5, k6 = jax.random.split(key, 7)

    x = jax.random.normal(kx, (B, M, N, D), dtype=jnp.float32)

    # Deterministic synthetic parameters (nn.Linear-like scale).
    scale = 1.0 / jnp.sqrt(D)
    wl = jax.random.uniform(k1, (D, H), jnp.float32, -scale, scale)
    bl = jax.random.uniform(k2, (1, H), jnp.float32, -scale, scale)
    wr = jax.random.uniform(k3, (D, H), jnp.float32, -scale, scale)
    br = jax.random.uniform(k4, (1, H), jnp.float32, -scale, scale)
    scale_o = 1.0 / jnp.sqrt(H)
    wo = jax.random.uniform(k5, (H, D), jnp.float32, -scale_o, scale_o)
    bo = jax.random.uniform(k6, (1, D), jnp.float32, -scale_o, scale_o)

    out = outer_mean(x, wl, bl, wr, br, wo, bo)
    out = jax.block_until_ready(out)

    ref = outer_mean_ref(x, wl, bl, wr, br, wo, bo)
    assert out.shape == (B, N, N, D)
    assert jnp.allclose(out, ref, atol=1e-4, rtol=1e-4)

    print("KERNEL_OK")
</pallas_src>

<mosaic_0001>
module attributes {stable_mosaic.version = 11 : i64} {
  func.func @_fused_proj_kernel(%arg0: i32, %arg1: i32, %arg2: memref<1x32x32xf32, #tpu.memory_space<vmem>>, %arg3: memref<64x32xf32, #tpu.memory_space<vmem>>, %arg4: memref<64x1xf32, #tpu.memory_space<vmem>>, %arg5: memref<1x64x32xf32, #tpu.memory_space<vmem>>) attributes {dimension_semantics = [#tpu.dimension_semantics<parallel>, #tpu.dimension_semantics<parallel>], iteration_bounds = array<i64: 2, 1>, scalar_prefetch = 0 : i64, scratch_operands = 0 : i64, tpu.core_type = #tpu.core_type<tc>, window_params = [{transform_indices = @transform_0, window_bounds = array<i64: 1, 32, 32>}, {pipeline_mode = #tpu.pipeline_mode<synchronous>, transform_indices = @transform_1, window_bounds = array<i64: 64, 32>}, {pipeline_mode = #tpu.pipeline_mode<synchronous>, transform_indices = @transform_2, window_bounds = array<i64: 64, 1>}, {transform_indices = @transform_3, window_bounds = array<i64: 1, 64, 32>}]} {
    %c0 = arith.constant 0 : index
    %c0_0 = arith.constant 0 : index
    %c0_1 = arith.constant 0 : index
    %0 = vector.load %arg2[%c0, %c0_0, %c0_1] : memref<1x32x32xf32, #tpu.memory_space<vmem>>, vector<1x32x32xf32>
    %1 = vector.shape_cast %0 : vector<1x32x32xf32> to vector<32x32xf32>
    %c0_2 = arith.constant 0 : index
    %c0_3 = arith.constant 0 : index
    %2 = vector.load %arg3[%c0_2, %c0_3] : memref<64x32xf32, #tpu.memory_space<vmem>>, vector<64x32xf32>
    %cst = arith.constant dense<0.000000e+00> : vector<64x32xf32>
    %3 = tpu.matmul %2, %1, %cst {dimension_numbers = #tpu.dot_dimension_numbers<[1], [1], [0], [0], [0, 0, 1, 0], [], []>} : vector<64x32xf32>, vector<32x32xf32>, vector<64x32xf32> -> vector<64x32xf32>
    %c0_4 = arith.constant 0 : index
    %c0_5 = arith.constant 0 : index
    %4 = vector.load %arg4[%c0_4, %c0_5] : memref<64x1xf32, #tpu.memory_space<vmem>>, vector<64x1xf32>
    %5 = vector.broadcast %4 : vector<64x1xf32> to vector<64x32xf32>
    %6 = arith.addf %3, %5 : vector<64x32xf32>
    %c0_6 = arith.constant 0 : index
    %c0_7 = arith.constant 0 : index
    %c0_8 = arith.constant 0 : index
    %7 = vector.load %arg5[%c0_6, %c0_7, %c0_8] : memref<1x64x32xf32, #tpu.memory_space<vmem>>, vector<1x64x32xf32>
    %8 = vector.shape_cast %7 : vector<1x64x32xf32> to vector<64x32xf32>
    %9 = vector.shape_cast %6 : vector<64x32xf32> to vector<1x64x32xf32>
    tpu.vector_store %arg5[%c0_6, %c0_7, %c0_8], %9 {strides = array<i32>} : memref<1x64x32xf32, #tpu.memory_space<vmem>>, vector<1x64x32xf32>,
    return
  }
  func.func @transform_0(%arg0: i32, %arg1: i32) -> (i32, i32, i32) {
    %c0_i32 = arith.constant 0 : i32
    %c0_i32_0 = arith.constant 0 : i32
    return %arg0, %arg1, %c0_i32 : i32, i32, i32
  }
  func.func @transform_1(%arg0: i32, %arg1: i32) -> (i32, i32) {
    %c0_i32 = arith.constant 0 : i32
    %c0_i32_0 = arith.constant 0 : i32
    %c0_i32_1 = arith.constant 0 : i32
    return %c0_i32, %c0_i32_0 : i32, i32
  }
  func.func @transform_2(%arg0: i32, %arg1: i32) -> (i32, i32) {
    %c0_i32 = arith.constant 0 : i32
    %c0_i32_0 = arith.constant 0 : i32
    %c0_i32_1 = arith.constant 0 : i32
    return %c0_i32, %c0_i32_0 : i32, i32
  }
  func.func @transform_3(%arg0: i32, %arg1: i32) -> (i32, i32, i32) {
    %c0_i32 = arith.constant 0 : i32
    %c0_i32_0 = arith.constant 0 : i32
    return %arg0, %c0_i32, %arg1 : i32, i32, i32
  }
}

</mosaic_0001>

<bundles_post_ra>
// kernel: tpu_custom_call.1
= control target key start
LH: loop header
LB: loop body
LE: loop exit
PB: predicated region body
PF: predicated region fallthrough
CT: control target
= control target key end

     0   :  { %s645_s12 = smov 0   ;;  %s647_s13 = smov 0   ;;  %s768_s0 = inlined_call_operand.vmem [shape: f32[2,32,32], index: 0, kind: input, shape index: {}]   ;;  %s769_s1 = inlined_call_operand.vmem [shape: f32[64,32], index: 1, kind: input, shape index: {}]   ;;  %s770_s2 = inlined_call_operand.vmem [shape: f32[64,1], index: 2, kind: input, shape index: {}]   ;;  %s771_s3 = inlined_call_operand.vmem [shape: f32[2,64,32], index: 3, kind: output, shape index: {}]  }
   0x1   :  { %s649_s14 = smov 0  }
   0x2 LB: > { %s25_s15 = sadd.s32 1, %s618_s13  ;;  %p504_p0 = scmp.ge.s32.totalorder %s622_s14, 1  ;;  %s622_s14 = sphi %s649_s14, %s13_s14   ;;  %s618_s13 = sphi %s647_s13, %s775_s13   ;;  %s614_s12 = sphi %s645_s12, %s774_s12  }
   0x3   : > { %p27_p1 = scmp.ge.s32.totalorder %s25_s15, 2  ;;  %p158_p2 = scmp.lt.s32.totalorder %s622_s14, 3 }
   0x5   : > { %s777_s15 = smov (%p27_p1, %s25_s15), 0  ;;  %p159_p3 = pnand %p504_p0, %p158_p2 }
   0x6   : > { %p190_p4 = scmp.lt.s32.totalorder (!%p159_p3), %s614_s12, 1  ;;  %vm267_vm0 = vcmask (!%p159_p3), 261120   ;;  %v211_v0 = vld [vmem:[%s769_s1] sm:$0xff] (!%p159_p3)  ;;  %v624_v2 = vmov (!%p159_p3), 0   ;;  %v221_v3 = vld [vmem:[%s770_s2 + $0x10] sm:$0xff] (!%p159_p3)  ;;  %v222_v6 = vld [vmem:[%s770_s2 + $0x18] sm:$0xff] (!%p159_p3) }
   0x7   : > { %162 = sbr.rel (%p159_p3) target bundleno = 256 (0x100), region = 32  ;;  %v215_v1 = vld [vmem:[%s769_s1 + $0x20] sm:$0xff] (!%p159_p3)  ;;  %545 = vmatprep.mubr.msk.f32.mxu0 (!%p159_p3), %vm267_vm0, %v211_v0  ;;  %599 = vset.pattern.permute.xlu1 (!%p159_p3), %v624_v2  ;;  %vm685_vm1 = vmpackc.low (!%p159_p3), %vm267_vm0, %vm267_vm0  ;;  %v220_v7 = vld [vmem:[%s770_s2 + $0x8] sm:$0xff] (!%p159_p3) }
   0x8   : > { %551 = vmatprep.mubr.msk.f32.mxu1 (!%p159_p3), %vm267_vm0, %v215_v1  ;;  %598 = vset.pattern.permute.xlu0 (!%p159_p3), %v624_v2  ;;  %v219_v4 = vld [vmem:[%s770_s2] sm:$0xff] (!%p159_p3)  ;;  %v224_v14 = vld [vmem:[%s770_s2 + $0x28] sm:$0xff] (!%p159_p3)  ;;  %v226_v16 = vld [vmem:[%s770_s2 + $0x38] sm:$0xff] (!%p159_p3) }
   0x9   : > { %239 = vperm.xlu1 (!%p159_p3), %599, %v221_v3   ;;  %229 = vperm.xlu0 (!%p159_p3), %598, %v219_v4   ;;  %v223_v15 = vld [vmem:[%s770_s2 + $0x20] sm:$0xff] (!%p159_p3)  ;;  %v225_v17 = vld [vmem:[%s770_s2 + $0x30] sm:$0xff] (!%p159_p3)  ;;  %v212_v18 = vld [vmem:[%s769_s1 + $0x8] sm:$0xff] (!%p159_p3) }
   0xa   : > { %v216_v19 = vld [vmem:[%s769_s1 + $0x28] sm:$0xff] (!%p159_p3)  ;;  %v213_v20 = vld [vmem:[%s769_s1 + $0x10] sm:$0xff] (!%p159_p3)  ;;  %v214_v22 = vld [vmem:[%s769_s1 + $0x18] sm:$0xff] (!%p159_p3) }
   0xb   : > { %v217_v21 = vld [vmem:[%s769_s1 + $0x30] sm:$0xff] (!%p159_p3)  ;;  %v218_v23 = vld [vmem:[%s769_s1 + $0x38] sm:$0xff] (!%p159_p3) }
   0xd   : > { %244 = vperm.xlu1 (!%p159_p3), %599, %v222_v6   ;;  %234 = vperm.xlu0 (!%p159_p3), %598, %v220_v7  }
   0xe   : > { %s779_s12 = smov (!%p190_p4, %s614_s12), 1 }
   0xf   : > { %s523_s24 = sshll.u32 %s779_s12, 5  ;;  %s524_s29 = sshll.u32 %s779_s12, 6 }
  0x10   : > { %s197_s27 = scalar_lea.vmem %s768_s0, %s523_s24  ;;  %s206_s5 = scalar_lea.vmem %s771_s3, %s524_s29 }
  0x11   : > { %v207_v8 = vld [vmem:[%s197_s27] sm:$0xff]  ;;  %v208_v9 = vld [vmem:[%s197_s27 + $0x8] sm:$0xff]  ;;  %v209_v10 = vld [vmem:[%s197_s27 + $0x10] sm:$0xff]  ;;  %254 = vperm.xlu1 %599, %v224_v14   ;;  %249 = vperm.xlu0 %598, %v223_v15  }
  0x12   : > { %v557_v11 = vpack.c.bf16 %v208_v9, %v207_v8  ;;  %v210_v12 = vld [vmem:[%s197_s27 + $0x18] sm:$0xff] }
  0x13   : > { %v563_v13 = vpack.c.bf16 %v210_v12, %v209_v10 }
  0x14   : > { %559 = vmatprep.subr.msk.bf16.mxu0 %vm685_vm1, %v557_v11  ;;  %569 = vmatprep.subr.msk.bf16.mxu1 %vm685_vm1, %v557_v11 }
  0x15   : > { %562 = vmatpush3.bf16.xpose.msk.msra.mxu0 %vm685_vm1, %v557_v11  ;;  %571 = vmatpush3.bf16.xpose.msk.msra.mxu1 %vm685_vm1, %v557_v11 }
  0x16   : > { %565 = vmatprep.subr.msk.bf16.mxu0 %vm685_vm1, %v563_v13  ;;  %570 = vmatprep.subr.msk.bf16.mxu1 %vm685_vm1, %v563_v13 }
  0x17   : > { %264 = vperm.xlu1 %599, %v226_v16   ;;  %259 = vperm.xlu0 %598, %v225_v17  }
  0x1d   : > { %568 = vmatpush3.bf16.xpose.msk.msra.mxu0 %vm685_vm1, %v563_v13  ;;  %572 = vmatpush3.bf16.xpose.msk.msra.mxu1 %vm685_vm1, %v563_v13 }
  0x24   : > { %546 = vmatmul.mubr.msk.f32.vlgmr.msra.gmra.mrb[0].mxu0 %vm267_vm0, %v212_v18  ;;  %552 = vmatmul.mubr.msk.f32.vlgmr.msra.gmra.mrb[0].mxu1 %vm267_vm0, %v216_v19 }
  0x25   : > { %548 = vmatprep.mubr.msk.f32.mxu0 %vm267_vm0, %v213_v20  ;;  %554 = vmatprep.mubr.msk.f32.mxu1 %vm267_vm0, %v217_v21 }
  0x28   : > { %549 = vmatmul.mubr.msk.f32.gmra.mrb[2].mxu0 %vm267_vm0, %v214_v22  ;;  %555 = vmatmul.mubr.msk.f32.gmra.mrb[2].mxu1 %vm267_vm0, %v218_v23 }
  0x88   : > { %v240_v24 = vpop.permute.xlu1 %239  ;;  %v230_v25 = vpop.permute.xlu0 %229 }
  0x8c   : > { %v245_v26 = vpop.permute.xlu1 %244  ;;  %v235_v27 = vpop.permute.xlu0 %234 }
  0x90   : > { %v255_v28 = vpop.permute.xlu1 %254  ;;  %v250_v29 = vpop.permute.xlu0 %249 }
  0x96   : > { %v265_v38 = vpop.permute.xlu1 %264  ;;  %v260_v39 = vpop.permute.xlu0 %259 }
  0xf7   : > { %v547_v30 = vpop.f32.mrb[0].mxu0  ;;  %v553_v31 = vpop.f32.mrb[0].mxu1 }
  0xf8   : > { %v376_v32 = vadd.f32 %v547_v30, %v235_v27  ;;  %v396_v33 = vadd.f32 %v553_v31, %v255_v28  ;;  %v370_v34 = vpop.f32.mrb[1].mxu0  ;;  %v390_v35 = vpop.f32.mrb[1].mxu1 }
  0xf9   : > { %v371_v36 = vadd.f32 %v370_v34, %v230_v25  ;;  %v391_v37 = vadd.f32 %v390_v35, %v250_v29 }
  0xfa   : > { %410 = vst.msk [vmem:[%s206_s5 + $0x8] sm:$0xff] %vm267_vm0, %v376_v32  ;;  %414 = vst.msk [vmem:[%s206_s5 + $0x28] sm:$0xff] %vm267_vm0, %v396_v33 }
  0xfb   : > { %409 = vst.msk [vmem:[%s206_s5] sm:$0xff] %vm267_vm0, %v371_v36  ;;  %413 = vst.msk [vmem:[%s206_s5 + $0x20] sm:$0xff] %vm267_vm0, %v391_v37  ;;  %v550_v40 = vpop.f32.mrb[2].mxu0  ;;  %v556_v41 = vpop.f32.mrb[2].mxu1 }
  0xfc   : > { %v386_v42 = vadd.f32 %v550_v40, %v245_v26  ;;  %v406_v43 = vadd.f32 %v556_v41, %v265_v38  ;;  %v380_v44 = vpop.f32.mrb[3].mxu0  ;;  %v400_v45 = vpop.f32.mrb[3].mxu1 }
  0xfd   : > { %v381_v46 = vadd.f32 %v380_v44, %v240_v24  ;;  %v401_v47 = vadd.f32 %v400_v45, %v260_v39 }
  0xfe   : > { %412 = vst.msk [vmem:[%s206_s5 + $0x18] sm:$0xff] %vm267_vm0, %v386_v42  ;;  %416 = vst.msk [vmem:[%s206_s5 + $0x38] sm:$0xff] %vm267_vm0, %v406_v43 }
  0xff   : > { %411 = vst.msk [vmem:[%s206_s5 + $0x10] sm:$0xff] %vm267_vm0, %v381_v46  ;;  %415 = vst.msk [vmem:[%s206_s5 + $0x30] sm:$0xff] %vm267_vm0, %v401_v47 }
 0x100 PF: > { %s13_s14 = sadd.s32 1, %s622_s14   ;;  %s774_s12 = smov %s618_s13 }
 0x101   : > { %p10_p5 = scmp.ge.s32.totalorder %s13_s14, 4   ;;  %s775_s13 = smov %s777_s15 }
 0x103   :  { %12 = sbr.rel (!%p10_p5) target bundleno = 2 (0x2), region = 62 }

</bundles_post_ra>
